<compile_context>
chip_gen: v7x
topology: tpu7x:2x2x1
jax: 0.10.0
libtpu: 0.0.40
codegen_flags: <defaults>
</compile_context>

<pallas_src>
import functools

import jax
import jax.numpy as jnp
from jax.experimental import pallas as pl
from jax.experimental.pallas import tpu as pltpu

BN_EPS = 1e-5
_LANE = 128      # lane width: pad K and Cout to multiples of this
_SUBLANE = 16    # bf16-friendly sublane multiple for the row tile


def _round_up(x, m):
    return (x + m - 1) // m * m


# ----------------------------- Pallas kernels ------------------------------ #

def _matmul_bn_kernel(x_ref, w_ref, s_ref, b_ref, o_ref, *, relu_out):
    # x_ref: (tp, Kp) bf16 row tile; w_ref: (Kp, Cp) bf16; s/b: (1, Cp) f32
    y = jnp.dot(x_ref[...], w_ref[...], preferred_element_type=jnp.float32)
    y = y * s_ref[...] + b_ref[...]
    if relu_out:
        y = jnp.maximum(y, 0.0)
    o_ref[...] = y


def _matmul_bn_add_kernel(x_ref, w_ref, s_ref, b_ref, r_ref, o_ref, *, relu_out):
    # Same as above, fusing the basic block's residual addition (f32).
    y = jnp.dot(x_ref[...], w_ref[...], preferred_element_type=jnp.float32)
    y = y * s_ref[...] + b_ref[...] + r_ref[...]
    if relu_out:
        y = jnp.maximum(y, 0.0)
    o_ref[...] = y


def _fused_matmul_bn(x2d, w2d, scale, bias, *, relu_out=False, residual2d=None,
                     tile_p=512):
    """(P,K) @ (K,Cout) * scale + bias [+ residual] [-> ReLU], tiled over P."""
    P, K = x2d.shape
    Cout = w2d.shape[1]

    Kp = _round_up(K, _LANE)
    Cp = _round_up(Cout, _LANE)
    tp = min(tile_p, _round_up(P, _SUBLANE))
    Pp = _round_up(P, tp)

    # Zero-pad operands: K padding contributes 0 to the dot; padded rows /
    # output columns are sliced off below.
    x_p = jnp.zeros((Pp, Kp), jnp.bfloat16).at[:P, :K].set(
        x2d.astype(jnp.bfloat16))
    w_p = jnp.zeros((Kp, Cp), jnp.bfloat16).at[:K, :Cout].set(
        w2d.astype(jnp.bfloat16))
    s_p = jnp.zeros((1, Cp), jnp.float32).at[:, :Cout].set(
        scale.reshape(1, Cout).astype(jnp.float32))
    b_p = jnp.zeros((1, Cp), jnp.float32).at[:, :Cout].set(
        bias.reshape(1, Cout).astype(jnp.float32))

    args = [x_p, w_p, s_p, b_p]
    in_specs = [
        pl.BlockSpec((tp, Kp), lambda i: (i, 0)),   # row-tiled activations
        pl.BlockSpec((Kp, Cp), lambda i: (0, 0)),   # weights resident
        pl.BlockSpec((1, Cp), lambda i: (0, 0)),    # folded BN scale
        pl.BlockSpec((1, Cp), lambda i: (0, 0)),    # folded BN bias
    ]
    if residual2d is None:
        kernel = functools.partial(_matmul_bn_kernel, relu_out=relu_out)
    else:
        r_p = jnp.zeros((Pp, Cp), jnp.float32).at[:P, :Cout].set(
            residual2d.astype(jnp.float32))
        args.append(r_p)
        in_specs.append(pl.BlockSpec((tp, Cp), lambda i: (i, 0)))
        kernel = functools.partial(_matmul_bn_add_kernel, relu_out=relu_out)

    out = pl.pallas_call(
        kernel,
        grid=(Pp // tp,),
        in_specs=in_specs,
        out_specs=pl.BlockSpec((tp, Cp), lambda i: (i, 0)),
        out_shape=jax.ShapeDtypeStruct((Pp, Cp), jnp.float32),
        compiler_params=pltpu.CompilerParams(
            dimension_semantics=("parallel",),
            vmem_limit_bytes=32 * 1024 * 1024,
        ),
    )(*args)
    return out[:P, :Cout]


# ------------------------------- JAX "glue" -------------------------------- #

def _im2col(x_nhwc, ksize, stride, padding):
    N, H, W, C = x_nhwc.shape
    xp = jnp.pad(x_nhwc, ((0, 0), (padding, padding), (padding, padding), (0, 0)))
    Ho = (H + 2 * padding - ksize) // stride + 1
    Wo = (W + 2 * padding - ksize) // stride + 1
    cols = []
    for kh in range(ksize):
        for kw in range(ksize):
            cols.append(xp[:, kh:kh + stride * Ho:stride,
                           kw:kw + stride * Wo:stride, :])
    pat = jnp.stack(cols, axis=3)                      # (N, Ho, Wo, k*k, C)
    return pat.reshape(N * Ho * Wo, ksize * ksize * C), (N, Ho, Wo)


def conv_bn(x_nhwc, w_oihw, gamma, beta, mean, var, *, ksize, stride, padding,
            relu_out=False, residual_nhwc=None):
    """Conv2d(no bias) -> folded BatchNorm (eval) [+ residual] [-> ReLU].

    The *input* ReLU of a ReLUConvBN stage is applied by the caller (once on
    the NHWC tensor, or fused into the producing kernel's epilogue), never on
    the 9x-expanded im2col patches.
    """
    Cout, Cin = w_oihw.shape[0], w_oihw.shape[1]
    patches, (N, Ho, Wo) = _im2col(x_nhwc, ksize, stride, padding)
    # (Cout, Cin, kh, kw) -> (kh, kw, Cin, Cout) -> (k*k*Cin, Cout); matches
    # the (kh, kw, cin) ordering used when building the patches.
    w_mat = jnp.transpose(w_oihw, (2, 3, 1, 0)).reshape(ksize * ksize * Cin, Cout)
    scale = gamma / jnp.sqrt(var + BN_EPS)
    bias = beta - mean * scale
    res2d = None if residual_nhwc is None else residual_nhwc.reshape(
        N * Ho * Wo, Cout)
    out = _fused_matmul_bn(patches, w_mat, scale, bias,
                           relu_out=relu_out, residual2d=res2d)
    return out.reshape(N, Ho, Wo, Cout)


def downsample_stride2(x_nhwc, w_oihw):
    """AvgPool2d(2,2) + Conv2d 1x1 (no bias, no BN) — the stride==2 shortcut."""
    N, H, W, C = x_nhwc.shape
    Cout = w_oihw.shape[0]
    pooled = x_nhwc.reshape(N, H // 2, 2, W // 2, 2, C).mean(axis=(2, 4))
    w_mat = jnp.transpose(w_oihw, (2, 3, 1, 0)).reshape(C, Cout)
    out = _fused_matmul_bn(pooled.reshape(-1, C), w_mat,
                           jnp.ones((Cout,), jnp.float32),
                           jnp.zeros((Cout,), jnp.float32))
    return out.reshape(N, H // 2, W // 2, Cout)


def resnet_basicblock_forward(x_nchw, params, *, inplanes, planes, stride):
    x = jnp.transpose(x_nchw, (0, 2, 3, 1)).astype(jnp.float32)  # NCHW -> NHWC
    relu_x = jnp.maximum(x, 0.0)   # single ReLU pass shared by conv_a / 1x1 down

    pa, pb = params["conv_a"], params["conv_b"]
    # conv_a: the ReLU consumed by conv_b's ReLUConvBN is fused into the
    # kernel epilogue (relu_out=True), so conv_b reads its input directly.
    a_relu = conv_bn(relu_x, pa["w"], pa["gamma"], pa["beta"], pa["mean"],
                     pa["var"], ksize=3, stride=stride, padding=1,
                     relu_out=True)

    if stride == 2:
        res = downsample_stride2(x, params["down"]["w"])
    elif inplanes != planes:
        pd = params["down"]
        res = conv_bn(relu_x, pd["w"], pd["gamma"], pd["beta"], pd["mean"],
                      pd["var"], ksize=1, stride=1, padding=0)
    else:
        res = x

    out = conv_bn(a_relu, pb["w"], pb["gamma"], pb["beta"], pb["mean"],
                  pb["var"], ksize=3, stride=1, padding=1,
                  residual_nhwc=res)
    return jnp.transpose(out, (0, 3, 1, 2))                      # NHWC -> NCHW


# ------------------------- Deterministic parameters ------------------------ #

def init_params(key, inplanes, planes, stride):
    ks = jax.random.split(key, 16)

    def bn(kg, kb, km, kv, c):
        return dict(
            gamma=0.5 + jax.random.uniform(kg, (c,), jnp.float32),
            beta=0.1 * jax.random.normal(kb, (c,), jnp.float32),
            mean=0.1 * jax.random.normal(km, (c,), jnp.float32),
            var=0.5 + jax.random.uniform(kv, (c,), jnp.float32),
        )

    params = {
        "conv_a": dict(
            w=0.1 * jax.random.normal(ks[0], (planes, inplanes, 3, 3), jnp.float32),
            **bn(ks[1], ks[2], ks[3], ks[4], planes)),
        "conv_b": dict(
            w=0.1 * jax.random.normal(ks[5], (planes, planes, 3, 3), jnp.float32),
            **bn(ks[6], ks[7], ks[8], ks[9], planes)),
    }
    if stride == 2:
        params["down"] = dict(
            w=0.1 * jax.random.normal(ks[10], (planes, inplanes, 1, 1), jnp.float32))
    elif inplanes != planes:
        params["down"] = dict(
            w=0.1 * jax.random.normal(ks[10], (planes, inplanes, 1, 1), jnp.float32),
            **bn(ks[11], ks[12], ks[13], ks[14], planes))
    return params


# ---------------------------- Pure-JAX reference --------------------------- #
# The reference mirrors the kernel's numerics: bf16 matmul operands with f32
# accumulation, f32 BN / residual math.

def _conv_bf16_ref(x, w_oihw, stride, padding):
    return jax.lax.conv_general_dilated(
        x.astype(jnp.bfloat16),
        jnp.transpose(w_oihw, (2, 3, 1, 0)).astype(jnp.bfloat16),
        window_strides=(stride, stride),
        padding=[(padding, padding), (padding, padding)],
        dimension_numbers=("NHWC", "HWIO", "NHWC"),
        preferred_element_type=jnp.float32)


def _rcb_ref(x, p, stride, padding):
    y = _conv_bf16_ref(jnp.maximum(x, 0.0), p["w"], stride, padding)
    scale = p["gamma"] / jnp.sqrt(p["var"] + BN_EPS)
    return y * scale + (p["beta"] - p["mean"] * scale)


def reference_forward(x_nchw, params, *, inplanes, planes, stride):
    x = jnp.transpose(x_nchw, (0, 2, 3, 1)).astype(jnp.float32)
    a = _rcb_ref(x, params["conv_a"], stride, 1)
    if stride == 2:
        N, H, W, C = x.shape
        pooled = x.reshape(N, H // 2, 2, W // 2, 2, C).mean(axis=(2, 4))
        res = _conv_bf16_ref(pooled, params["down"]["w"], 1, 0)
    elif inplanes != planes:
        res = _rcb_ref(x, params["down"], 1, 0)
    else:
        res = x
    b = _rcb_ref(a, params["conv_b"], 1, 1)
    return jnp.transpose(res + b, (0, 3, 1, 2))


# ----------------------------------- main ----------------------------------- #

if __name__ == "__main__":
    configs = [
        dict(inplanes=4, planes=8, stride=2),   # avgpool + 1x1 conv shortcut
        dict(inplanes=8, planes=8, stride=1),   # identity shortcut
        dict(inplanes=4, planes=8, stride=1),   # ReLUConvBN 1x1 shortcut
    ]
    key = jax.random.PRNGKey(0)
    for cfg in configs:
        key, kx, kp = jax.random.split(key, 3)
        x = jax.random.normal(kx, (2, cfg["inplanes"], 16, 16), jnp.float32)  # NCHW
        params = init_params(kp, **cfg)

        fwd = jax.jit(functools.partial(resnet_basicblock_forward, **cfg))
        out = jax.block_until_ready(fwd(x, params))

        ref = reference_forward(x, params, **cfg)
        ho = 16 // cfg["stride"]
        assert out.shape == (2, cfg["planes"], ho, ho), (cfg, out.shape)
        max_err = float(jnp.max(jnp.abs(out - ref)))
        assert jnp.allclose(out, ref, atol=1e-2, rtol=1e-2), (cfg, max_err)
    print("KERNEL_OK")
</pallas_src>

<mosaic_0001>
module attributes {stable_mosaic.version = 11 : i64} {
  func.func @_matmul_bn_kernel(%arg0: i32, %arg1: memref<128x128xbf16, #tpu.memory_space<vmem>>, %arg2: memref<128x128xbf16, #tpu.memory_space<vmem>>, %arg3: memref<1x128xf32, #tpu.memory_space<vmem>>, %arg4: memref<1x128xf32, #tpu.memory_space<vmem>>, %arg5: memref<128x128xf32, #tpu.memory_space<vmem>>) attributes {dimension_semantics = [#tpu.dimension_semantics<parallel>], iteration_bounds = array<i64: 1>, scalar_prefetch = 0 : i64, scratch_operands = 0 : i64, tpu.core_type = #tpu.core_type<tc>, window_params = [{transform_indices = @transform_0, window_bounds = array<i64: 128, 128>}, {pipeline_mode = #tpu.pipeline_mode<synchronous>, transform_indices = @transform_1, window_bounds = array<i64: 128, 128>}, {pipeline_mode = #tpu.pipeline_mode<synchronous>, transform_indices = @transform_2, window_bounds = array<i64: 1, 128>}, {pipeline_mode = #tpu.pipeline_mode<synchronous>, transform_indices = @transform_3, window_bounds = array<i64: 1, 128>}, {transform_indices = @transform_4, window_bounds = array<i64: 128, 128>}]} {
    %c0 = arith.constant 0 : index
    %c0_0 = arith.constant 0 : index
    %0 = vector.load %arg1[%c0, %c0_0] : memref<128x128xbf16, #tpu.memory_space<vmem>>, vector<128x128xbf16>
    %c0_1 = arith.constant 0 : index
    %c0_2 = arith.constant 0 : index
    %1 = vector.load %arg2[%c0_1, %c0_2] : memref<128x128xbf16, #tpu.memory_space<vmem>>, vector<128x128xbf16>
    %cst = arith.constant dense<0.000000e+00> : vector<128x128xf32>
    %2 = tpu.matmul %0, %1, %cst {dimension_numbers = #tpu.dot_dimension_numbers<[1], [0], [0], [1], [0, 0, 1, 1], [], []>} : vector<128x128xbf16>, vector<128x128xbf16>, vector<128x128xf32> -> vector<128x128xf32>
    %c0_3 = arith.constant 0 : index
    %c0_4 = arith.constant 0 : index
    %3 = vector.load %arg3[%c0_3, %c0_4] : memref<1x128xf32, #tpu.memory_space<vmem>>, vector<1x128xf32>
    %4 = vector.broadcast %3 : vector<1x128xf32> to vector<128x128xf32>
    %5 = arith.mulf %2, %4 : vector<128x128xf32>
    %c0_5 = arith.constant 0 : index
    %c0_6 = arith.constant 0 : index
    %6 = vector.load %arg4[%c0_5, %c0_6] : memref<1x128xf32, #tpu.memory_space<vmem>>, vector<1x128xf32>
    %7 = vector.broadcast %6 : vector<1x128xf32> to vector<128x128xf32>
    %8 = arith.addf %5, %7 : vector<128x128xf32>
    %cst_7 = arith.constant 0.000000e+00 : f32
    %9 = vector.broadcast %cst_7 : f32 to vector<128x128xf32>
    %10 = arith.maximumf %8, %9 : vector<128x128xf32>
    %c0_8 = arith.constant 0 : index
    %c0_9 = arith.constant 0 : index
    %11 = vector.load %arg5[%c0_8, %c0_9] : memref<128x128xf32, #tpu.memory_space<vmem>>, vector<128x128xf32>
    tpu.vector_store %arg5[%c0_8, %c0_9], %10 {strides = array<i32>} : memref<128x128xf32, #tpu.memory_space<vmem>>, vector<128x128xf32>,
    return
  }
  func.func @transform_0(%arg0: i32) -> (i32, i32) {
    %c0_i32 = arith.constant 0 : i32
    %c0_i32_0 = arith.constant 0 : i32
    return %arg0, %c0_i32 : i32, i32
  }
  func.func @transform_1(%arg0: i32) -> (i32, i32) {
    %c0_i32 = arith.constant 0 : i32
    %c0_i32_0 = arith.constant 0 : i32
    %c0_i32_1 = arith.constant 0 : i32
    return %c0_i32, %c0_i32_0 : i32, i32
  }
  func.func @transform_2(%arg0: i32) -> (i32, i32) {
    %c0_i32 = arith.constant 0 : i32
    %c0_i32_0 = arith.constant 0 : i32
    %c0_i32_1 = arith.constant 0 : i32
    return %c0_i32, %c0_i32_0 : i32, i32
  }
  func.func @transform_3(%arg0: i32) -> (i32, i32) {
    %c0_i32 = arith.constant 0 : i32
    %c0_i32_0 = arith.constant 0 : i32
    %c0_i32_1 = arith.constant 0 : i32
    return %c0_i32, %c0_i32_0 : i32, i32
  }
  func.func @transform_4(%arg0: i32) -> (i32, i32) {
    %c0_i32 = arith.constant 0 : i32
    %c0_i32_0 = arith.constant 0 : i32
    return %arg0, %c0_i32 : i32, i32
  }
}

module attributes {stable_mosaic.version = 11 : i64} {
  func.func @_matmul_bn_kernel(%arg0: i32, %arg1: memref<128x128xbf16, #tpu.memory_space<vmem>>, %arg2: memref<128x128xbf16, #tpu.memory_space<vmem>>, %arg3: memref<1x128xf32, #tpu.memory_space<vmem>>, %arg4: memref<1x128xf32, #tpu.memory_space<vmem>>, %arg5: memref<128x128xf32, #tpu.memory_space<vmem>>) attributes {dimension_semantics = [#tpu.dimension_semantics<parallel>], iteration_bounds = array<i64: 1>, scalar_prefetch = 0 : i64, scratch_operands = 0 : i64, tpu.core_type = #tpu.core_type<tc>, window_params = [{transform_indices = @transform_0, window_bounds = array<i64: 128, 128>}, {pipeline_mode = #tpu.pipeline_mode<synchronous>, transform_indices = @transform_1, window_bounds = array<i64: 128, 128>}, {pipeline_mode = #tpu.pipeline_mode<synchronous>, transform_indices = @transform_2, window_bounds = array<i64: 1, 128>}, {pipeline_mode = #tpu.pipeline_mode<synchronous>, transform_indices = @transform_3, window_bounds = array<i64: 1, 128>}, {transform_indices = @transform_4, window_bounds = array<i64: 128, 128>}]} {
    %c0 = arith.constant 0 : index
    %c0_0 = arith.constant 0 : index
    %0 = vector.load %arg1[%c0, %c0_0] : memref<128x128xbf16, #tpu.memory_space<vmem>>, vector<128x128xbf16>
    %c0_1 = arith.constant 0 : index
    %c0_2 = arith.constant 0 : index
    %1 = vector.load %arg2[%c0_1, %c0_2] : memref<128x128xbf16, #tpu.memory_space<vmem>>, vector<128x128xbf16>
    %cst = arith.constant dense<0.000000e+00> : vector<128x128xf32>
    %2 = tpu.matmul %0, %1, %cst {dimension_numbers = #tpu.dot_dimension_numbers<[1], [0], [0], [1], [0, 0, 1, 1], [], []>} : vector<128x128xbf16>, vector<128x128xbf16>, vector<128x128xf32> -> vector<128x128xf32>
    %c0_3 = arith.constant 0 : index
    %c0_4 = arith.constant 0 : index
    %3 = vector.load %arg3[%c0_3, %c0_4] : memref<1x128xf32, #tpu.memory_space<vmem>>, vector<1x128xf32>
    %4 = vector.broadcast %3 : vector<1x128xf32> to vector<128x128xf32>
    %5 = arith.mulf %2, %4 : vector<128x128xf32>
    %c0_5 = arith.constant 0 : index
    %c0_6 = arith.constant 0 : index
    %6 = vector.load %arg4[%c0_5, %c0_6] : memref<1x128xf32, #tpu.memory_space<vmem>>, vector<1x128xf32>
    %7 = vector.broadcast %6 : vector<1x128xf32> to vector<128x128xf32>
    %8 = arith.addf %5, %7 : vector<128x128xf32>
    %c0_7 = arith.constant 0 : index
    %c0_8 = arith.constant 0 : index
    %9 = vector.load %arg5[%c0_7, %c0_8] : memref<128x128xf32, #tpu.memory_space<vmem>>, vector<128x128xf32>
    tpu.vector_store %arg5[%c0_7, %c0_8], %8 {strides = array<i32>} : memref<128x128xf32, #tpu.memory_space<vmem>>, vector<128x128xf32>,
    return
  }
  func.func @transform_0(%arg0: i32) -> (i32, i32) {
    %c0_i32 = arith.constant 0 : i32
    %c0_i32_0 = arith.constant 0 : i32
    return %arg0, %c0_i32 : i32, i32
  }
  func.func @transform_1(%arg0: i32) -> (i32, i32) {
    %c0_i32 = arith.constant 0 : i32
    %c0_i32_0 = arith.constant 0 : i32
    %c0_i32_1 = arith.constant 0 : i32
    return %c0_i32, %c0_i32_0 : i32, i32
  }
  func.func @transform_2(%arg0: i32) -> (i32, i32) {
    %c0_i32 = arith.constant 0 : i32
    %c0_i32_0 = arith.constant 0 : i32
    %c0_i32_1 = arith.constant 0 : i32
    return %c0_i32, %c0_i32_0 : i32, i32
  }
  func.func @transform_3(%arg0: i32) -> (i32, i32) {
    %c0_i32 = arith.constant 0 : i32
    %c0_i32_0 = arith.constant 0 : i32
    %c0_i32_1 = arith.constant 0 : i32
    return %c0_i32, %c0_i32_0 : i32, i32
  }
  func.func @transform_4(%arg0: i32) -> (i32, i32) {
    %c0_i32 = arith.constant 0 : i32
    %c0_i32_0 = arith.constant 0 : i32
    return %arg0, %c0_i32 : i32, i32
  }
}

module attributes {stable_mosaic.version = 11 : i64} {
  func.func @_matmul_bn_add_kernel(%arg0: i32, %arg1: memref<128x128xbf16, #tpu.memory_space<vmem>>, %arg2: memref<128x128xbf16, #tpu.memory_space<vmem>>, %arg3: memref<1x128xf32, #tpu.memory_space<vmem>>, %arg4: memref<1x128xf32, #tpu.memory_space<vmem>>, %arg5: memref<128x128xf32, #tpu.memory_space<vmem>>, %arg6: memref<128x128xf32, #tpu.memory_space<vmem>>) attributes {dimension_semantics = [#tpu.dimension_semantics<parallel>], iteration_bounds = array<i64: 1>, scalar_prefetch = 0 : i64, scratch_operands = 0 : i64, tpu.core_type = #tpu.core_type<tc>, window_params = [{transform_indices = @transform_0, window_bounds = array<i64: 128, 128>}, {pipeline_mode = #tpu.pipeline_mode<synchronous>, transform_indices = @transform_1, window_bounds = array<i64: 128, 128>}, {pipeline_mode = #tpu.pipeline_mode<synchronous>, transform_indices = @transform_2, window_bounds = array<i64: 1, 128>}, {pipeline_mode = #tpu.pipeline_mode<synchronous>, transform_indices = @transform_3, window_bounds = array<i64: 1, 128>}, {transform_indices = @transform_4, window_bounds = array<i64: 128, 128>}, {transform_indices = @transform_5, window_bounds = array<i64: 128, 128>}]} {
    %c0 = arith.constant 0 : index
    %c0_0 = arith.constant 0 : index
    %0 = vector.load %arg1[%c0, %c0_0] : memref<128x128xbf16, #tpu.memory_space<vmem>>, vector<128x128xbf16>
    %c0_1 = arith.constant 0 : index
    %c0_2 = arith.constant 0 : index
    %1 = vector.load %arg2[%c0_1, %c0_2] : memref<128x128xbf16, #tpu.memory_space<vmem>>, vector<128x128xbf16>
    %cst = arith.constant dense<0.000000e+00> : vector<128x128xf32>
    %2 = tpu.matmul %0, %1, %cst {dimension_numbers = #tpu.dot_dimension_numbers<[1], [0], [0], [1], [0, 0, 1, 1], [], []>} : vector<128x128xbf16>, vector<128x128xbf16>, vector<128x128xf32> -> vector<128x128xf32>
    %c0_3 = arith.constant 0 : index
    %c0_4 = arith.constant 0 : index
    %3 = vector.load %arg3[%c0_3, %c0_4] : memref<1x128xf32, #tpu.memory_space<vmem>>, vector<1x128xf32>
    %4 = vector.broadcast %3 : vector<1x128xf32> to vector<128x128xf32>
    %5 = arith.mulf %2, %4 : vector<128x128xf32>
    %c0_5 = arith.constant 0 : index
    %c0_6 = arith.constant 0 : index
    %6 = vector.load %arg4[%c0_5, %c0_6] : memref<1x128xf32, #tpu.memory_space<vmem>>, vector<1x128xf32>
    %7 = vector.broadcast %6 : vector<1x128xf32> to vector<128x128xf32>
    %8 = arith.addf %5, %7 : vector<128x128xf32>
    %c0_7 = arith.constant 0 : index
    %c0_8 = arith.constant 0 : index
    %9 = vector.load %arg5[%c0_7, %c0_8] : memref<128x128xf32, #tpu.memory_space<vmem>>, vector<128x128xf32>
    %10 = arith.addf %8, %9 : vector<128x128xf32>
    %c0_9 = arith.constant 0 : index
    %c0_10 = arith.constant 0 : index
    %11 = vector.load %arg6[%c0_9, %c0_10] : memref<128x128xf32, #tpu.memory_space<vmem>>, vector<128x128xf32>
    tpu.vector_store %arg6[%c0_9, %c0_10], %10 {strides = array<i32>} : memref<128x128xf32, #tpu.memory_space<vmem>>, vector<128x128xf32>,
    return
  }
  func.func @transform_0(%arg0: i32) -> (i32, i32) {
    %c0_i32 = arith.constant 0 : i32
    %c0_i32_0 = arith.constant 0 : i32
    return %arg0, %c0_i32 : i32, i32
  }
  func.func @transform_1(%arg0: i32) -> (i32, i32) {
    %c0_i32 = arith.constant 0 : i32
    %c0_i32_0 = arith.constant 0 : i32
    %c0_i32_1 = arith.constant 0 : i32
    return %c0_i32, %c0_i32_0 : i32, i32
  }
  func.func @transform_2(%arg0: i32) -> (i32, i32) {
    %c0_i32 = arith.constant 0 : i32
    %c0_i32_0 = arith.constant 0 : i32
    %c0_i32_1 = arith.constant 0 : i32
    return %c0_i32, %c0_i32_0 : i32, i32
  }
  func.func @transform_3(%arg0: i32) -> (i32, i32) {
    %c0_i32 = arith.constant 0 : i32
    %c0_i32_0 = arith.constant 0 : i32
    %c0_i32_1 = arith.constant 0 : i32
    return %c0_i32, %c0_i32_0 : i32, i32
  }
  func.func @transform_4(%arg0: i32) -> (i32, i32) {
    %c0_i32 = arith.constant 0 : i32
    %c0_i32_0 = arith.constant 0 : i32
    return %arg0, %c0_i32 : i32, i32
  }
  func.func @transform_5(%arg0: i32) -> (i32, i32) {
    %c0_i32 = arith.constant 0 : i32
    %c0_i32_0 = arith.constant 0 : i32
    return %arg0, %c0_i32 : i32, i32
  }
}

</mosaic_0001>

<bundles_post_ra>
// kernel: resnet_basicblock_forward.3
= control target key start
LH: loop header
LB: loop body
LE: loop exit
PB: predicated region body
PF: predicated region fallthrough
CT: control target
= control target key end

     0   :  { %s568_s1 = inlined_call_operand.vmem [shape: bf16[128,128], index: 1, kind: input, shape index: {}]   ;;  %s569_s0 = inlined_call_operand.vmem [shape: bf16[128,128], index: 0, kind: input, shape index: {}]   ;;  %s570_s2 = inlined_call_operand.vmem [shape: f32[1,128], index: 2, kind: input, shape index: {}]   ;;  %s571_s3 = inlined_call_operand.vmem [shape: f32[1,128], index: 3, kind: input, shape index: {}]   ;;  %s572_s4 = inlined_call_operand.vmem [shape: f32[128,128], index: 4, kind: output, shape index: {}]  }
   0x1   :  { %v407_v0 = vld [vmem:[%s568_s1] sm:$0xff]   ;;  %v408_v1 = vld [vmem:[%s568_s1 + $0x8] sm:$0xff]   ;;  %v409_v2 = vld [vmem:[%s568_s1 + $0x10] sm:$0xff]  }
   0x2   :  { %359 = vmatprep.subr.bf16.mxu0 %v407_v0  ;;  %391 = vmatprep.subr.bf16.mxu1 %v407_v0  ;;  %v410_v3 = vld [vmem:[%s568_s1 + $0x18] sm:$0xff]   ;;  %v415_v4 = vld [vmem:[%s569_s0] sm:$0xff]   ;;  %v412_v7 = vld [vmem:[%s568_s1 + $0x28] sm:$0xff]  }
   0x3   :  { %360 = vmatpush3.bf16.msra.mxu0 %v407_v0  ;;  %399 = vmatpush3.bf16.msra.mxu1 %v407_v0  ;;  %v416_v5 = vld [vmem:[%s569_s0 + $0x20] sm:$0xff]   ;;  %v413_v8 = vld [vmem:[%s568_s1 + $0x30] sm:$0xff]   ;;  %v414_v9 = vld [vmem:[%s568_s1 + $0x38] sm:$0xff]  }
   0x4   :  { %361 = vmatprep.subr.bf16.mxu0 %v408_v1  ;;  %392 = vmatprep.subr.bf16.mxu1 %v408_v1  ;;  %v411_v6 = vld [vmem:[%s568_s1 + $0x20] sm:$0xff]   ;;  %v417_v10 = vld [vmem:[%s569_s0 + $0x8] sm:$0xff]   ;;  %v419_v12 = vld [vmem:[%s569_s0 + $0x10] sm:$0xff]  }
   0x5   :  { %375 = vmatprep.mubr.bf16.mxu0 %v415_v4  ;;  %383 = vmatprep.mubr.bf16.mxu1 %v416_v5  ;;  %v418_v11 = vld [vmem:[%s569_s0 + $0x28] sm:$0xff]   ;;  %v420_v13 = vld [vmem:[%s569_s0 + $0x30] sm:$0xff]   ;;  %v421_v14 = vld [vmem:[%s569_s0 + $0x18] sm:$0xff]  }
   0x6   :  { %v422_v15 = vld [vmem:[%s569_s0 + $0x38] sm:$0xff]   ;;  %v341_v16 = vld [vmem:[%s570_s2] ss:$0 sm:$0xff] }
   0x7   :  { %362 = vmatpush3.bf16.msra.mxu0 %v408_v1  ;;  %400 = vmatpush3.bf16.msra.mxu1 %v408_v1  ;;  %v502_v18 = vld [vmem:[%s571_s3] ss:$0 sm:$0xff] }
   0x8   :  { %363 = vmatprep.subr.bf16.mxu0 %v409_v2  ;;  %393 = vmatprep.subr.bf16.mxu1 %v409_v2 }
   0xb   :  { %364 = vmatpush3.bf16.msra.mxu0 %v409_v2  ;;  %401 = vmatpush3.bf16.msra.mxu1 %v409_v2 }
   0xc   :  { %365 = vmatprep.subr.bf16.mxu0 %v410_v3  ;;  %394 = vmatprep.subr.bf16.mxu1 %v410_v3 }
   0xf   :  { %366 = vmatpush3.bf16.msra.mxu0 %v410_v3  ;;  %402 = vmatpush3.bf16.msra.mxu1 %v410_v3 }
  0x10   :  { %367 = vmatprep.subr.bf16.mxu0 %v411_v6  ;;  %395 = vmatprep.subr.bf16.mxu1 %v411_v6 }
  0x13   :  { %368 = vmatpush3.bf16.msra.mxu0 %v411_v6  ;;  %403 = vmatpush3.bf16.msra.mxu1 %v411_v6 }
  0x14   :  { %369 = vmatprep.subr.bf16.mxu0 %v412_v7  ;;  %396 = vmatprep.subr.bf16.mxu1 %v412_v7 }
  0x17   :  { %370 = vmatpush3.bf16.msra.mxu0 %v412_v7  ;;  %404 = vmatpush3.bf16.msra.mxu1 %v412_v7 }
  0x18   :  { %371 = vmatprep.subr.bf16.mxu0 %v413_v8  ;;  %397 = vmatprep.subr.bf16.mxu1 %v413_v8 }
  0x1b   :  { %372 = vmatpush3.bf16.msra.mxu0 %v413_v8  ;;  %405 = vmatpush3.bf16.msra.mxu1 %v413_v8 }
  0x1c   :  { %373 = vmatprep.subr.bf16.mxu0 %v414_v9  ;;  %398 = vmatprep.subr.bf16.mxu1 %v414_v9 }
  0x1f   :  { %374 = vmatpush3.bf16.msra.mxu0 %v414_v9  ;;  %406 = vmatpush3.bf16.msra.mxu1 %v414_v9 }
  0x22   :  { %376 = vmatmul.mubr.bf16.vlgmr.msra.gmra.mrb[0].mxu0 %v417_v10  ;;  %384 = vmatmul.mubr.bf16.vlgmr.msra.gmra.mrb[0].mxu1 %v418_v11 }
  0x23   :  { %379 = vmatprep.mubr.bf16.mxu0 %v419_v12  ;;  %387 = vmatprep.mubr.bf16.mxu1 %v420_v13 }
  0x2a   :  { %380 = vmatmul.mubr.bf16.gmra.mrb[4].mxu0 %v421_v14  ;;  %388 = vmatmul.mubr.bf16.gmra.mrb[4].mxu1 %v422_v15 }
  0xf5   :  { %v377_v17 = vpop.f32.mrb[0].mxu0  ;;  %v385_v19 = vpop.f32.mrb[0].mxu1 }
  0xf6   :  { %v252_v20 = vmul.f32 %v377_v17, %v341_v16  ;;  %v260_v21 = vmul.f32 %v385_v19, %v341_v16  ;;  %v180_v22 = vpop.f32.mrb[1].mxu0  ;;  %v212_v23 = vpop.f32.mrb[1].mxu1 }
  0xf7   :  { %v250_v24 = vmul.f32 %v341_v16, %v180_v22  ;;  %v258_v25 = vmul.f32 %v341_v16, %v212_v23  ;;  %v378_v26 = vpop.f32.mrb[2].mxu0  ;;  %v386_v27 = vpop.f32.mrb[2].mxu1 }
  0xf8   :  { %v275_v28 = vadd.f32 %v502_v18, %v252_v20  ;;  %v283_v29 = vadd.f32 %v502_v18, %v260_v21  ;;  %v253_v30 = vmul.f32 %v378_v26, %v341_v16  ;;  %v261_v31 = vmul.f32 %v386_v27, %v341_v16  ;;  %v183_v32 = vpop.f32.mrb[3].mxu0  ;;  %v215_v33 = vpop.f32.mrb[3].mxu1 }
  0xf9   :  { %v273_v34 = vadd.f32 %v502_v18, %v250_v24  ;;  %v281_v35 = vadd.f32 %v502_v18, %v258_v25  ;;  %v251_v36 = vmul.f32 %v341_v16, %v183_v32  ;;  %v259_v37 = vmul.f32 %v341_v16, %v215_v33 }
  0xfa   :  { %v291_v38 = vmax.f32 %v275_v28, 0.0  ;;  %v299_v39 = vmax.f32 %v283_v29, 0.0  ;;  %v276_v40 = vadd.f32 %v502_v18, %v253_v30  ;;  %v284_v41 = vadd.f32 %v502_v18, %v261_v31 }
  0xfb   :  { %v289_v42 = vmax.f32 %v273_v34, 0.0  ;;  %v297_v43 = vmax.f32 %v281_v35, 0.0  ;;  %v274_v44 = vadd.f32 %v502_v18, %v251_v36  ;;  %v282_v45 = vadd.f32 %v502_v18, %v259_v37 }
  0xfc   :  { %307 = vst [vmem:[%s572_s4 + $0x10] sm:$0xff] %v291_v38  ;;  %315 = vst [vmem:[%s572_s4 + $0x50] sm:$0xff] %v299_v39  ;;  %v292_v46 = vmax.f32 %v276_v40, 0.0  ;;  %v300_v47 = vmax.f32 %v284_v41, 0.0 }
  0xfd   :  { %305 = vst [vmem:[%s572_s4] sm:$0xff] %v289_v42  ;;  %313 = vst [vmem:[%s572_s4 + $0x40] sm:$0xff] %v297_v43  ;;  %v290_v48 = vmax.f32 %v274_v44, 0.0  ;;  %v298_v49 = vmax.f32 %v282_v45, 0.0  ;;  %v381_v50 = vpop.f32.mrb[4].mxu0  ;;  %v389_v51 = vpop.f32.mrb[4].mxu1 }
  0xfe   :  { %308 = vst [vmem:[%s572_s4 + $0x18] sm:$0xff] %v292_v46  ;;  %316 = vst [vmem:[%s572_s4 + $0x58] sm:$0xff] %v300_v47  ;;  %v256_v52 = vmul.f32 %v381_v50, %v341_v16  ;;  %v264_v53 = vmul.f32 %v389_v51, %v341_v16  ;;  %v196_v54 = vpop.f32.mrb[5].mxu0  ;;  %v228_v55 = vpop.f32.mrb[5].mxu1 }
  0xff   :  { %306 = vst [vmem:[%s572_s4 + $0x8] sm:$0xff] %v290_v48  ;;  %314 = vst [vmem:[%s572_s4 + $0x48] sm:$0xff] %v298_v49  ;;  %v254_v56 = vmul.f32 %v341_v16, %v196_v54  ;;  %v262_v57 = vmul.f32 %v341_v16, %v228_v55  ;;  %v382_v58 = vpop.f32.mrb[6].mxu0  ;;  %v390_v59 = vpop.f32.mrb[6].mxu1 }
 0x100   :  { %v279_v60 = vadd.f32 %v502_v18, %v256_v52  ;;  %v287_v61 = vadd.f32 %v502_v18, %v264_v53  ;;  %v257_v62 = vmul.f32 %v382_v58, %v341_v16  ;;  %v265_v63 = vmul.f32 %v390_v59, %v341_v16  ;;  %v199_v0 = vpop.f32.mrb[7].mxu0  ;;  %v231_v1 = vpop.f32.mrb[7].mxu1 }
 0x101   :  { %v277_v2 = vadd.f32 %v502_v18, %v254_v56  ;;  %v285_v3 = vadd.f32 %v502_v18, %v262_v57  ;;  %v255_v4 = vmul.f32 %v341_v16, %v199_v0  ;;  %v263_v5 = vmul.f32 %v341_v16, %v231_v1 }
 0x102   :  { %v295_v6 = vmax.f32 %v279_v60, 0.0  ;;  %v303_v7 = vmax.f32 %v287_v61, 0.0  ;;  %v280_v8 = vadd.f32 %v502_v18, %v257_v62  ;;  %v288_v9 = vadd.f32 %v502_v18, %v265_v63 }
 0x103   :  { %v293_v10 = vmax.f32 %v277_v2, 0.0  ;;  %v301_v11 = vmax.f32 %v285_v3, 0.0  ;;  %v278_v12 = vadd.f32 %v502_v18, %v255_v4  ;;  %v286_v13 = vadd.f32 %v502_v18, %v263_v5 }
 0x104   :  { %311 = vst [vmem:[%s572_s4 + $0x30] sm:$0xff] %v295_v6  ;;  %319 = vst [vmem:[%s572_s4 + $0x70] sm:$0xff] %v303_v7  ;;  %v296_v14 = vmax.f32 %v280_v8, 0.0  ;;  %v304_v15 = vmax.f32 %v288_v9, 0.0 }
 0x105   :  { %309 = vst [vmem:[%s572_s4 + $0x20] sm:$0xff] %v293_v10  ;;  %317 = vst [vmem:[%s572_s4 + $0x60] sm:$0xff] %v301_v11  ;;  %v294_v16 = vmax.f32 %v278_v12, 0.0  ;;  %v302_v17 = vmax.f32 %v286_v13, 0.0 }
 0x106   :  { %312 = vst [vmem:[%s572_s4 + $0x38] sm:$0xff] %v296_v14  ;;  %320 = vst [vmem:[%s572_s4 + $0x78] sm:$0xff] %v304_v15 }
 0x107   :  { %310 = vst [vmem:[%s572_s4 + $0x28] sm:$0xff] %v294_v16  ;;  %318 = vst [vmem:[%s572_s4 + $0x68] sm:$0xff] %v302_v17 }

// kernel: resnet_basicblock_forward.4
= control target key start
LH: loop header
LB: loop body
LE: loop exit
PB: predicated region body
PF: predicated region fallthrough
CT: control target
= control target key end

     0   :  { %s534_s1 = inlined_call_operand.vmem [shape: bf16[128,128], index: 1, kind: input, shape index: {}]   ;;  %s535_s0 = inlined_call_operand.vmem [shape: bf16[128,128], index: 0, kind: input, shape index: {}]   ;;  %s536_s2 = inlined_call_operand.vmem [shape: f32[1,128], index: 2, kind: input, shape index: {}]   ;;  %s537_s3 = inlined_call_operand.vmem [shape: f32[1,128], index: 3, kind: input, shape index: {}]   ;;  %s538_s4 = inlined_call_operand.vmem [shape: f32[128,128], index: 4, kind: output, shape index: {}]  }
   0x1   :  { %v391_v0 = vld [vmem:[%s534_s1] sm:$0xff]   ;;  %v392_v1 = vld [vmem:[%s534_s1 + $0x8] sm:$0xff]   ;;  %v393_v2 = vld [vmem:[%s534_s1 + $0x10] sm:$0xff]  }
   0x2   :  { %343 = vmatprep.subr.bf16.mxu0 %v391_v0  ;;  %375 = vmatprep.subr.bf16.mxu1 %v391_v0  ;;  %v394_v3 = vld [vmem:[%s534_s1 + $0x18] sm:$0xff]   ;;  %v399_v4 = vld [vmem:[%s535_s0] sm:$0xff]   ;;  %v396_v7 = vld [vmem:[%s534_s1 + $0x28] sm:$0xff]  }
   0x3   :  { %344 = vmatpush3.bf16.msra.mxu0 %v391_v0  ;;  %383 = vmatpush3.bf16.msra.mxu1 %v391_v0  ;;  %v400_v5 = vld [vmem:[%s535_s0 + $0x20] sm:$0xff]   ;;  %v397_v8 = vld [vmem:[%s534_s1 + $0x30] sm:$0xff]   ;;  %v398_v9 = vld [vmem:[%s534_s1 + $0x38] sm:$0xff]  }
   0x4   :  { %345 = vmatprep.subr.bf16.mxu0 %v392_v1  ;;  %376 = vmatprep.subr.bf16.mxu1 %v392_v1  ;;  %v395_v6 = vld [vmem:[%s534_s1 + $0x20] sm:$0xff]   ;;  %v401_v10 = vld [vmem:[%s535_s0 + $0x8] sm:$0xff]   ;;  %v403_v12 = vld [vmem:[%s535_s0 + $0x10] sm:$0xff]  }
   0x5   :  { %359 = vmatprep.mubr.bf16.mxu0 %v399_v4  ;;  %367 = vmatprep.mubr.bf16.mxu1 %v400_v5  ;;  %v402_v11 = vld [vmem:[%s535_s0 + $0x28] sm:$0xff]   ;;  %v404_v13 = vld [vmem:[%s535_s0 + $0x30] sm:$0xff]   ;;  %v405_v14 = vld [vmem:[%s535_s0 + $0x18] sm:$0xff]  }
   0x6   :  { %v406_v15 = vld [vmem:[%s535_s0 + $0x38] sm:$0xff]   ;;  %v325_v16 = vld [vmem:[%s536_s2] ss:$0 sm:$0xff] }
   0x7   :  { %346 = vmatpush3.bf16.msra.mxu0 %v392_v1  ;;  %384 = vmatpush3.bf16.msra.mxu1 %v392_v1  ;;  %v326_v18 = vld [vmem:[%s537_s3] ss:$0 sm:$0xff] }
   0x8   :  { %347 = vmatprep.subr.bf16.mxu0 %v393_v2  ;;  %377 = vmatprep.subr.bf16.mxu1 %v393_v2 }
   0xb   :  { %348 = vmatpush3.bf16.msra.mxu0 %v393_v2  ;;  %385 = vmatpush3.bf16.msra.mxu1 %v393_v2 }
   0xc   :  { %349 = vmatprep.subr.bf16.mxu0 %v394_v3  ;;  %378 = vmatprep.subr.bf16.mxu1 %v394_v3 }
   0xf   :  { %350 = vmatpush3.bf16.msra.mxu0 %v394_v3  ;;  %386 = vmatpush3.bf16.msra.mxu1 %v394_v3 }
  0x10   :  { %351 = vmatprep.subr.bf16.mxu0 %v395_v6  ;;  %379 = vmatprep.subr.bf16.mxu1 %v395_v6 }
  0x13   :  { %352 = vmatpush3.bf16.msra.mxu0 %v395_v6  ;;  %387 = vmatpush3.bf16.msra.mxu1 %v395_v6 }
  0x14   :  { %353 = vmatprep.subr.bf16.mxu0 %v396_v7  ;;  %380 = vmatprep.subr.bf16.mxu1 %v396_v7 }
  0x17   :  { %354 = vmatpush3.bf16.msra.mxu0 %v396_v7  ;;  %388 = vmatpush3.bf16.msra.mxu1 %v396_v7 }
  0x18   :  { %355 = vmatprep.subr.bf16.mxu0 %v397_v8  ;;  %381 = vmatprep.subr.bf16.mxu1 %v397_v8 }
  0x1b   :  { %356 = vmatpush3.bf16.msra.mxu0 %v397_v8  ;;  %389 = vmatpush3.bf16.msra.mxu1 %v397_v8 }
  0x1c   :  { %357 = vmatprep.subr.bf16.mxu0 %v398_v9  ;;  %382 = vmatprep.subr.bf16.mxu1 %v398_v9 }
  0x1f   :  { %358 = vmatpush3.bf16.msra.mxu0 %v398_v9  ;;  %390 = vmatpush3.bf16.msra.mxu1 %v398_v9 }
  0x22   :  { %360 = vmatmul.mubr.bf16.vlgmr.msra.gmra.mrb[0].mxu0 %v401_v10  ;;  %368 = vmatmul.mubr.bf16.vlgmr.msra.gmra.mrb[0].mxu1 %v402_v11 }
  0x23   :  { %363 = vmatprep.mubr.bf16.mxu0 %v403_v12  ;;  %371 = vmatprep.mubr.bf16.mxu1 %v404_v13 }
  0x2a   :  { %364 = vmatmul.mubr.bf16.gmra.mrb[4].mxu0 %v405_v14  ;;  %372 = vmatmul.mubr.bf16.gmra.mrb[4].mxu1 %v406_v15 }
  0xf5   :  { %v361_v17 = vpop.f32.mrb[0].mxu0  ;;  %v369_v19 = vpop.f32.mrb[0].mxu1 }
  0xf6   :  { %v252_v20 = vmul.f32 %v361_v17, %v325_v16  ;;  %v260_v21 = vmul.f32 %v369_v19, %v325_v16  ;;  %v180_v22 = vpop.f32.mrb[1].mxu0  ;;  %v212_v23 = vpop.f32.mrb[1].mxu1 }
  0xf7   :  { %v250_v24 = vmul.f32 %v325_v16, %v180_v22  ;;  %v258_v25 = vmul.f32 %v325_v16, %v212_v23  ;;  %v362_v26 = vpop.f32.mrb[2].mxu0  ;;  %v370_v27 = vpop.f32.mrb[2].mxu1 }
  0xf8   :  { %v275_v28 = vadd.f32 %v326_v18, %v252_v20  ;;  %v283_v29 = vadd.f32 %v326_v18, %v260_v21  ;;  %v253_v30 = vmul.f32 %v362_v26, %v325_v16  ;;  %v261_v31 = vmul.f32 %v370_v27, %v325_v16  ;;  %v183_v32 = vpop.f32.mrb[3].mxu0  ;;  %v215_v33 = vpop.f32.mrb[3].mxu1 }
  0xf9   :  { %v273_v34 = vadd.f32 %v326_v18, %v250_v24  ;;  %v281_v35 = vadd.f32 %v326_v18, %v258_v25  ;;  %v251_v36 = vmul.f32 %v325_v16, %v183_v32  ;;  %v259_v37 = vmul.f32 %v325_v16, %v215_v33 }
  0xfa   :  { %291 = vst [vmem:[%s538_s4 + $0x10] sm:$0xff] %v275_v28  ;;  %299 = vst [vmem:[%s538_s4 + $0x50] sm:$0xff] %v283_v29  ;;  %v276_v38 = vadd.f32 %v326_v18, %v253_v30  ;;  %v284_v39 = vadd.f32 %v326_v18, %v261_v31 }
  0xfb   :  { %289 = vst [vmem:[%s538_s4] sm:$0xff] %v273_v34  ;;  %297 = vst [vmem:[%s538_s4 + $0x40] sm:$0xff] %v281_v35  ;;  %v274_v40 = vadd.f32 %v326_v18, %v251_v36  ;;  %v282_v41 = vadd.f32 %v326_v18, %v259_v37 }
  0xfc   :  { %292 = vst [vmem:[%s538_s4 + $0x18] sm:$0xff] %v276_v38  ;;  %300 = vst [vmem:[%s538_s4 + $0x58] sm:$0xff] %v284_v39 }
  0xfd   :  { %290 = vst [vmem:[%s538_s4 + $0x8] sm:$0xff] %v274_v40  ;;  %298 = vst [vmem:[%s538_s4 + $0x48] sm:$0xff] %v282_v41  ;;  %v365_v42 = vpop.f32.mrb[4].mxu0  ;;  %v373_v43 = vpop.f32.mrb[4].mxu1 }
  0xfe   :  { %v256_v44 = vmul.f32 %v365_v42, %v325_v16  ;;  %v264_v45 = vmul.f32 %v373_v43, %v325_v16  ;;  %v196_v46 = vpop.f32.mrb[5].mxu0  ;;  %v228_v47 = vpop.f32.mrb[5].mxu1 }
  0xff   :  { %v254_v48 = vmul.f32 %v325_v16, %v196_v46  ;;  %v262_v49 = vmul.f32 %v325_v16, %v228_v47  ;;  %v366_v50 = vpop.f32.mrb[6].mxu0  ;;  %v374_v51 = vpop.f32.mrb[6].mxu1 }
 0x100   :  { %v279_v52 = vadd.f32 %v326_v18, %v256_v44  ;;  %v287_v53 = vadd.f32 %v326_v18, %v264_v45  ;;  %v257_v54 = vmul.f32 %v366_v50, %v325_v16  ;;  %v265_v55 = vmul.f32 %v374_v51, %v325_v16  ;;  %v199_v56 = vpop.f32.mrb[7].mxu0  ;;  %v231_v57 = vpop.f32.mrb[7].mxu1 }
 0x101   :  { %v277_v58 = vadd.f32 %v326_v18, %v254_v48  ;;  %v285_v59 = vadd.f32 %v326_v18, %v262_v49  ;;  %v255_v60 = vmul.f32 %v325_v16, %v199_v56  ;;  %v263_v61 = vmul.f32 %v325_v16, %v231_v57 }
 0x102   :  { %295 = vst [vmem:[%s538_s4 + $0x30] sm:$0xff] %v279_v52  ;;  %303 = vst [vmem:[%s538_s4 + $0x70] sm:$0xff] %v287_v53  ;;  %v280_v62 = vadd.f32 %v326_v18, %v257_v54  ;;  %v288_v63 = vadd.f32 %v326_v18, %v265_v55 }
 0x103   :  { %293 = vst [vmem:[%s538_s4 + $0x20] sm:$0xff] %v277_v58  ;;  %301 = vst [vmem:[%s538_s4 + $0x60] sm:$0xff] %v285_v59  ;;  %v278_v0 = vadd.f32 %v326_v18, %v255_v60  ;;  %v286_v1 = vadd.f32 %v326_v18, %v263_v61 }
 0x104   :  { %296 = vst [vmem:[%s538_s4 + $0x38] sm:$0xff] %v280_v62  ;;  %304 = vst [vmem:[%s538_s4 + $0x78] sm:$0xff] %v288_v63 }
 0x105   :  { %294 = vst [vmem:[%s538_s4 + $0x28] sm:$0xff] %v278_v0  ;;  %302 = vst [vmem:[%s538_s4 + $0x68] sm:$0xff] %v286_v1 }

// kernel: resnet_basicblock_forward.5
= control target key start
LH: loop header
LB: loop body
LE: loop exit
PB: predicated region body
PF: predicated region fallthrough
CT: control target
= control target key end

     0   :  { %s658_s1 = inlined_call_operand.vmem [shape: bf16[128,128], index: 1, kind: input, shape index: {}]   ;;  %s659_s0 = inlined_call_operand.vmem [shape: bf16[128,128], index: 0, kind: input, shape index: {}]   ;;  %s660_s2 = inlined_call_operand.vmem [shape: f32[1,128], index: 2, kind: input, shape index: {}]   ;;  %s661_s3 = inlined_call_operand.vmem [shape: f32[1,128], index: 3, kind: input, shape index: {}]   ;;  %s662_s4 = inlined_call_operand.vmem [shape: f32[128,128], index: 4, kind: input, shape index: {}]   ;;  %s663_s5 = inlined_call_operand.vmem [shape: f32[128,128], index: 5, kind: output, shape index: {}]  }
   0x1   :  { %v426_v0 = vld [vmem:[%s658_s1] sm:$0xff]   ;;  %v427_v1 = vld [vmem:[%s658_s1 + $0x8] sm:$0xff]   ;;  %v428_v2 = vld [vmem:[%s658_s1 + $0x10] sm:$0xff]  }
   0x2   :  { %378 = vmatprep.subr.bf16.mxu0 %v426_v0  ;;  %410 = vmatprep.subr.bf16.mxu1 %v426_v0  ;;  %v429_v3 = vld [vmem:[%s658_s1 + $0x18] sm:$0xff]   ;;  %v434_v4 = vld [vmem:[%s659_s0] sm:$0xff]   ;;  %v431_v7 = vld [vmem:[%s658_s1 + $0x28] sm:$0xff]  }
   0x3   :  { %379 = vmatpush3.bf16.msra.mxu0 %v426_v0  ;;  %418 = vmatpush3.bf16.msra.mxu1 %v426_v0  ;;  %v435_v5 = vld [vmem:[%s659_s0 + $0x20] sm:$0xff]   ;;  %v432_v8 = vld [vmem:[%s658_s1 + $0x30] sm:$0xff]   ;;  %v433_v9 = vld [vmem:[%s658_s1 + $0x38] sm:$0xff]  }
   0x4   :  { %380 = vmatprep.subr.bf16.mxu0 %v427_v1  ;;  %411 = vmatprep.subr.bf16.mxu1 %v427_v1  ;;  %v430_v6 = vld [vmem:[%s658_s1 + $0x20] sm:$0xff]   ;;  %v436_v10 = vld [vmem:[%s659_s0 + $0x8] sm:$0xff]   ;;  %v438_v12 = vld [vmem:[%s659_s0 + $0x10] sm:$0xff]  }
   0x5   :  { %394 = vmatprep.mubr.bf16.mxu0 %v434_v4  ;;  %402 = vmatprep.mubr.bf16.mxu1 %v435_v5  ;;  %v437_v11 = vld [vmem:[%s659_s0 + $0x28] sm:$0xff]   ;;  %v439_v13 = vld [vmem:[%s659_s0 + $0x30] sm:$0xff]   ;;  %v440_v14 = vld [vmem:[%s659_s0 + $0x18] sm:$0xff]  }
   0x6   :  { %v441_v15 = vld [vmem:[%s659_s0 + $0x38] sm:$0xff]   ;;  %v523_v16 = vld [vmem:[%s660_s2] ss:$0 sm:$0xff]  ;;  %v294_v24 = vld [vmem:[%s662_s4 + $0x10] sm:$0xff] }
   0x7   :  { %381 = vmatpush3.bf16.msra.mxu0 %v427_v1  ;;  %419 = vmatpush3.bf16.msra.mxu1 %v427_v1  ;;  %v528_v18 = vld [vmem:[%s661_s3] ss:$0 sm:$0xff]  ;;  %v302_v25 = vld [vmem:[%s662_s4 + $0x50] sm:$0xff]  ;;  %v295_v40 = vld [vmem:[%s662_s4 + $0x18] sm:$0xff] }
   0x8   :  { %382 = vmatprep.subr.bf16.mxu0 %v428_v2  ;;  %412 = vmatprep.subr.bf16.mxu1 %v428_v2  ;;  %v292_v32 = vld [vmem:[%s662_s4] sm:$0xff]  ;;  %v303_v41 = vld [vmem:[%s662_s4 + $0x58] sm:$0xff]  ;;  %v293_v48 = vld [vmem:[%s662_s4 + $0x8] sm:$0xff] }
   0x9   :  { %v300_v33 = vld [vmem:[%s662_s4 + $0x40] sm:$0xff]  ;;  %v301_v49 = vld [vmem:[%s662_s4 + $0x48] sm:$0xff]  ;;  %v298_v0 = vld [vmem:[%s662_s4 + $0x30] sm:$0xff] }
   0xa   :  { %v306_v1 = vld [vmem:[%s662_s4 + $0x70] sm:$0xff] }
   0xb   :  { %383 = vmatpush3.bf16.msra.mxu0 %v428_v2  ;;  %420 = vmatpush3.bf16.msra.mxu1 %v428_v2 }
   0xc   :  { %384 = vmatprep.subr.bf16.mxu0 %v429_v3  ;;  %413 = vmatprep.subr.bf16.mxu1 %v429_v3 }
   0xf   :  { %385 = vmatpush3.bf16.msra.mxu0 %v429_v3  ;;  %421 = vmatpush3.bf16.msra.mxu1 %v429_v3 }
  0x10   :  { %386 = vmatprep.subr.bf16.mxu0 %v430_v6  ;;  %414 = vmatprep.subr.bf16.mxu1 %v430_v6 }
  0x13   :  { %387 = vmatpush3.bf16.msra.mxu0 %v430_v6  ;;  %422 = vmatpush3.bf16.msra.mxu1 %v430_v6 }
  0x14   :  { %388 = vmatprep.subr.bf16.mxu0 %v431_v7  ;;  %415 = vmatprep.subr.bf16.mxu1 %v431_v7 }
  0x17   :  { %389 = vmatpush3.bf16.msra.mxu0 %v431_v7  ;;  %423 = vmatpush3.bf16.msra.mxu1 %v431_v7 }
  0x18   :  { %390 = vmatprep.subr.bf16.mxu0 %v432_v8  ;;  %416 = vmatprep.subr.bf16.mxu1 %v432_v8 }
  0x1b   :  { %391 = vmatpush3.bf16.msra.mxu0 %v432_v8  ;;  %424 = vmatpush3.bf16.msra.mxu1 %v432_v8  ;;  %v296_v8 = vld [vmem:[%s662_s4 + $0x20] sm:$0xff] }
  0x1c   :  { %392 = vmatprep.subr.bf16.mxu0 %v433_v9  ;;  %417 = vmatprep.subr.bf16.mxu1 %v433_v9 }
  0x1f   :  { %393 = vmatpush3.bf16.msra.mxu0 %v433_v9  ;;  %425 = vmatpush3.bf16.msra.mxu1 %v433_v9  ;;  %v304_v9 = vld [vmem:[%s662_s4 + $0x60] sm:$0xff] }
  0x22   :  { %395 = vmatmul.mubr.bf16.vlgmr.msra.gmra.mrb[0].mxu0 %v436_v10  ;;  %403 = vmatmul.mubr.bf16.vlgmr.msra.gmra.mrb[0].mxu1 %v437_v11 }
  0x23   :  { %398 = vmatprep.mubr.bf16.mxu0 %v438_v12  ;;  %406 = vmatprep.mubr.bf16.mxu1 %v439_v13 }
  0x2a   :  { %399 = vmatmul.mubr.bf16.gmra.mrb[4].mxu0 %v440_v14  ;;  %407 = vmatmul.mubr.bf16.gmra.mrb[4].mxu1 %v441_v15 }
  0xf5   :  { %v396_v17 = vpop.f32.mrb[0].mxu0  ;;  %v404_v19 = vpop.f32.mrb[0].mxu1 }
  0xf6   :  { %v255_v20 = vmul.f32 %v396_v17, %v523_v16  ;;  %v263_v21 = vmul.f32 %v404_v19, %v523_v16  ;;  %v183_v22 = vpop.f32.mrb[1].mxu0  ;;  %v215_v23 = vpop.f32.mrb[1].mxu1  ;;  %v299_v17 = vld [vmem:[%s662_s4 + $0x38] sm:$0xff] }
  0xf7   :  { %v253_v26 = vmul.f32 %v523_v16, %v183_v22  ;;  %v261_v27 = vmul.f32 %v523_v16, %v215_v23  ;;  %v397_v28 = vpop.f32.mrb[2].mxu0  ;;  %v405_v29 = vpop.f32.mrb[2].mxu1  ;;  %v307_v19 = vld [vmem:[%s662_s4 + $0x78] sm:$0xff] }
  0xf8   :  { %v278_v30 = vadd.f32 %v528_v18, %v255_v20  ;;  %v286_v31 = vadd.f32 %v528_v18, %v263_v21  ;;  %v256_v34 = vmul.f32 %v397_v28, %v523_v16  ;;  %v264_v35 = vmul.f32 %v405_v29, %v523_v16  ;;  %v186_v36 = vpop.f32.mrb[3].mxu0  ;;  %v218_v37 = vpop.f32.mrb[3].mxu1 }
  0xf9   :  { %v276_v38 = vadd.f32 %v528_v18, %v253_v26  ;;  %v284_v39 = vadd.f32 %v528_v18, %v261_v27  ;;  %v254_v42 = vmul.f32 %v523_v16, %v186_v36  ;;  %v262_v43 = vmul.f32 %v523_v16, %v218_v37  ;;  %v297_v26 = vld [vmem:[%s662_s4 + $0x28] sm:$0xff] }
  0xfa   :  { %v310_v44 = vadd.f32 %v294_v24, %v278_v30  ;;  %v318_v45 = vadd.f32 %v302_v25, %v286_v31  ;;  %v279_v46 = vadd.f32 %v528_v18, %v256_v34  ;;  %v287_v47 = vadd.f32 %v528_v18, %v264_v35  ;;  %v305_v27 = vld [vmem:[%s662_s4 + $0x68] sm:$0xff] }
  0xfb   :  { %v308_v50 = vadd.f32 %v292_v32, %v276_v38  ;;  %v316_v51 = vadd.f32 %v300_v33, %v284_v39  ;;  %v277_v52 = vadd.f32 %v528_v18, %v254_v42  ;;  %v285_v53 = vadd.f32 %v528_v18, %v262_v43 }
  0xfc   :  { %326 = vst [vmem:[%s663_s5 + $0x10] sm:$0xff] %v310_v44  ;;  %334 = vst [vmem:[%s663_s5 + $0x50] sm:$0xff] %v318_v45  ;;  %v311_v54 = vadd.f32 %v295_v40, %v279_v46  ;;  %v319_v55 = vadd.f32 %v303_v41, %v287_v47 }
  0xfd   :  { %324 = vst [vmem:[%s663_s5] sm:$0xff] %v308_v50  ;;  %332 = vst [vmem:[%s663_s5 + $0x40] sm:$0xff] %v316_v51  ;;  %v309_v56 = vadd.f32 %v293_v48, %v277_v52  ;;  %v317_v57 = vadd.f32 %v301_v49, %v285_v53  ;;  %v400_v58 = vpop.f32.mrb[4].mxu0  ;;  %v408_v59 = vpop.f32.mrb[4].mxu1 }
  0xfe   :  { %327 = vst [vmem:[%s663_s5 + $0x18] sm:$0xff] %v311_v54  ;;  %335 = vst [vmem:[%s663_s5 + $0x58] sm:$0xff] %v319_v55  ;;  %v259_v60 = vmul.f32 %v400_v58, %v523_v16  ;;  %v267_v61 = vmul.f32 %v408_v59, %v523_v16  ;;  %v199_v62 = vpop.f32.mrb[5].mxu0  ;;  %v231_v63 = vpop.f32.mrb[5].mxu1 }
  0xff   :  { %325 = vst [vmem:[%s663_s5 + $0x8] sm:$0xff] %v309_v56  ;;  %333 = vst [vmem:[%s663_s5 + $0x48] sm:$0xff] %v317_v57  ;;  %v257_v2 = vmul.f32 %v523_v16, %v199_v62  ;;  %v265_v3 = vmul.f32 %v523_v16, %v231_v63  ;;  %v401_v4 = vpop.f32.mrb[6].mxu0  ;;  %v409_v5 = vpop.f32.mrb[6].mxu1 }
 0x100   :  { %v282_v6 = vadd.f32 %v528_v18, %v259_v60  ;;  %v290_v7 = vadd.f32 %v528_v18, %v267_v61  ;;  %v260_v10 = vmul.f32 %v401_v4, %v523_v16  ;;  %v268_v11 = vmul.f32 %v409_v5, %v523_v16  ;;  %v202_v12 = vpop.f32.mrb[7].mxu0  ;;  %v234_v13 = vpop.f32.mrb[7].mxu1 }
 0x101   :  { %v280_v14 = vadd.f32 %v528_v18, %v257_v2  ;;  %v288_v15 = vadd.f32 %v528_v18, %v265_v3  ;;  %v258_v20 = vmul.f32 %v523_v16, %v202_v12  ;;  %v266_v21 = vmul.f32 %v523_v16, %v234_v13 }
 0x102   :  { %v314_v22 = vadd.f32 %v298_v0, %v282_v6  ;;  %v322_v23 = vadd.f32 %v306_v1, %v290_v7  ;;  %v283_v24 = vadd.f32 %v528_v18, %v260_v10  ;;  %v291_v25 = vadd.f32 %v528_v18, %v268_v11 }
 0x103   :  { %v312_v28 = vadd.f32 %v296_v8, %v280_v14  ;;  %v320_v29 = vadd.f32 %v304_v9, %v288_v15  ;;  %v281_v30 = vadd.f32 %v528_v18, %v258_v20  ;;  %v289_v16 = vadd.f32 %v528_v18, %v266_v21 }
 0x104   :  { %330 = vst [vmem:[%s663_s5 + $0x30] sm:$0xff] %v314_v22  ;;  %338 = vst [vmem:[%s663_s5 + $0x70] sm:$0xff] %v322_v23  ;;  %v315_v31 = vadd.f32 %v299_v17, %v283_v24  ;;  %v323_v32 = vadd.f32 %v307_v19, %v291_v25 }
 0x105   :  { %328 = vst [vmem:[%s663_s5 + $0x20] sm:$0xff] %v312_v28  ;;  %336 = vst [vmem:[%s663_s5 + $0x60] sm:$0xff] %v320_v29  ;;  %v313_v33 = vadd.f32 %v297_v26, %v281_v30  ;;  %v321_v18 = vadd.f32 %v305_v27, %v289_v16 }
 0x106   :  { %331 = vst [vmem:[%s663_s5 + $0x38] sm:$0xff] %v315_v31  ;;  %339 = vst [vmem:[%s663_s5 + $0x78] sm:$0xff] %v323_v32 }
 0x107   :  { %329 = vst [vmem:[%s663_s5 + $0x28] sm:$0xff] %v313_v33  ;;  %337 = vst [vmem:[%s663_s5 + $0x68] sm:$0xff] %v321_v18 }

</bundles_post_ra>
